<compile_context>
chip_gen: v7x
topology: tpu7x:2x2x1
jax: 0.10.0
libtpu: 0.0.40
codegen_flags: <defaults>
</compile_context>

<pallas_src>
import functools

import jax
import jax.numpy as jnp
from jax import lax
from jax.experimental import pallas as pl
from jax.experimental.pallas import tpu as pltpu

NPAD = 128  # lane-dense padding for the FINAL (FC2) output only; never pads a K dim


# ----------------------------- Pallas kernels ------------------------------ #
def _mm_bias_relu_kernel(apply_relu, x_ref, w_ref, b_ref, o_ref):
    """(tile_m, K) @ (K, N) + (1, N) [+ReLU]; bf16 operands, f32 accumulation."""
    acc = jnp.dot(x_ref[...], w_ref[...], preferred_element_type=jnp.float32)
    acc = acc + b_ref[...]                     # (1, N) broadcasts over rows
    if apply_relu:
        acc = jnp.maximum(acc, 0.0)
    o_ref[...] = acc.astype(o_ref.dtype)


def _pick_tile_m(M):
    # Prefer an exact divisor giving >=2 grid steps (v7x megacore), largest first.
    for t in (512, 256, 128, 64):
        if M % t == 0 and M // t >= 2:
            return t
    if M > 256:          # ragged large M: pad up to a multiple of 256
        return 256
    if M > 16 and M % 16 == 0:
        return M // 2    # two small 8-aligned blocks
    return M             # tiny M: one full block


def matmul_bias_relu(x, w, b2d, *, relu=True, out_dtype=jnp.bfloat16):
    """x:(M,K) @ w:(K,N) + b:(1,N) [+ReLU] -> (M,N); M-tiled 'parallel' grid."""
    M, K = x.shape
    K2, N = w.shape
    assert K == K2, (K, K2)
    tile_m = _pick_tile_m(M)
    n_blk = pl.cdiv(M, tile_m)
    Mp = n_blk * tile_m
    if Mp != M:                                # pad ragged M; sliced off below
        x = jnp.pad(x, ((0, Mp - M), (0, 0)))
    out = pl.pallas_call(
        functools.partial(_mm_bias_relu_kernel, relu),
        out_shape=jax.ShapeDtypeStruct((Mp, N), out_dtype),
        grid=(n_blk,),
        in_specs=[
            pl.BlockSpec((tile_m, K), lambda i: (i, 0)),
            pl.BlockSpec((K, N), lambda i: (0, 0)),
            pl.BlockSpec((1, N), lambda i: (0, 0)),
        ],
        out_specs=pl.BlockSpec((tile_m, N), lambda i: (i, 0)),
        compiler_params=pltpu.CompilerParams(dimension_semantics=("parallel",)),
    )(x, w, b2d)
    return out[:M] if Mp != M else out


def _fc_head_kernel(x_ref, w1_ref, b1_ref, w2_ref, b2_ref, o_ref):
    """Fused FC1 + ReLU + FC2 (operands are small, VMEM-resident per block)."""
    h = jnp.dot(x_ref[...], w1_ref[...], preferred_element_type=jnp.float32)
    h = jnp.maximum(h + b1_ref[...], 0.0)
    out = jnp.dot(h.astype(w2_ref.dtype), w2_ref[...],
                  preferred_element_type=jnp.float32) + b2_ref[...]
    o_ref[...] = out.astype(o_ref.dtype)


def fc_head(x, w1, b1, w2, b2):
    B, K1 = x.shape
    N1 = w1.shape[1]
    N2 = w2.shape[1]
    # Split the batch into 2 parallel blocks when it is big enough (v7x 2 TCs);
    # for tiny B the head is negligible compute and a single block is fine.
    tile_b = B // 2 if (B % 16 == 0) else B
    return pl.pallas_call(
        _fc_head_kernel,
        out_shape=jax.ShapeDtypeStruct((B, N2), jnp.float32),
        grid=(B // tile_b,),
        in_specs=[
            pl.BlockSpec((tile_b, K1), lambda i: (i, 0)),
            pl.BlockSpec((K1, N1), lambda i: (0, 0)),
            pl.BlockSpec((1, N1), lambda i: (0, 0)),
            pl.BlockSpec((N1, N2), lambda i: (0, 0)),
            pl.BlockSpec((1, N2), lambda i: (0, 0)),
        ],
        out_specs=pl.BlockSpec((tile_b, N2), lambda i: (i, 0)),
        compiler_params=pltpu.CompilerParams(dimension_semantics=("parallel",)),
    )(x, w1, b1, w2, b2)


# -------------------------------- conv glue -------------------------------- #
def _im2col_nhwc(x, k, s):
    """x: (B, H, W, C) -> (B*Ho*Wo, k*k*C); K ordered (kh, kw, c) to match weights."""
    B, H, W, C = x.shape
    Ho = (H - k) // s + 1
    Wo = (W - k) // s + 1
    pats = [x[:, kh:kh + s * Ho:s, kw:kw + s * Wo:s, :]
            for kh in range(k) for kw in range(k)]
    col = jnp.stack(pats, axis=3)                     # (B, Ho, Wo, k*k, C)
    return col.reshape(B * Ho * Wo, k * k * C), Ho, Wo


def conv_out(h, k, s):
    return (h - k) // s + 1


# ------------------------------ params ------------------------------------- #
def init_params(key, input_shape, num_actions):
    """PyTorch-layout parameters (Conv OIHW, Linear (out, in)), xavier-normal weights."""
    C, H, W = input_shape
    h1, w1 = conv_out(H, 8, 4), conv_out(W, 8, 4)
    h2, w2 = conv_out(h1, 4, 2), conv_out(w1, 4, 2)
    h3, w3 = conv_out(h2, 3, 1), conv_out(w2, 3, 1)
    feat = 64 * h3 * w3

    def xavier(k_, shape, fan_in, fan_out):
        std = (2.0 / (fan_in + fan_out)) ** 0.5
        return jax.random.normal(k_, shape, dtype=jnp.float32) * std

    ks = jax.random.split(key, 5)
    params = {
        "c1_w": xavier(ks[0], (32, C, 8, 8), C * 64, 32 * 64),
        "c1_b": jnp.zeros((32,), jnp.float32),
        "c2_w": xavier(ks[1], (64, 32, 4, 4), 32 * 16, 64 * 16),
        "c2_b": jnp.zeros((64,), jnp.float32),
        "c3_w": xavier(ks[2], (64, 64, 3, 3), 64 * 9, 64 * 9),
        "c3_b": jnp.zeros((64,), jnp.float32),
        "f1_w": xavier(ks[3], (512, feat), feat, 512),
        "f1_b": jnp.zeros((512,), jnp.float32),
        "f2_w": xavier(ks[4], (num_actions, 512), 512, num_actions),
        "f2_b": jnp.zeros((num_actions,), jnp.float32),
    }
    return params, feat


def prepare_params(params, input_shape, num_actions):
    """One-time conversion to kernel layout: bf16 (K, N) matrices with UNPADDED K/N for
    the conv stack, FC1 rows permuted to the kernel's (p, c) flatten order, FC2 output
    padded to a lane-dense 128 (sliced off after the kernel)."""
    C, H, W = input_shape
    h1, w1 = conv_out(H, 8, 4), conv_out(W, 8, 4)
    h2, w2 = conv_out(h1, 4, 2), conv_out(w1, 4, 2)
    h3, w3 = conv_out(h2, 3, 1), conv_out(w2, 3, 1)
    P = h3 * w3

    def conv_weight(w):            # OIHW -> (kh*kw*Cin, O), K order (kh, kw, c)
        O = w.shape[0]
        return w.transpose(0, 2, 3, 1).reshape(O, -1).T.astype(jnp.bfloat16)

    def bias2d(b):
        return b.reshape(1, -1).astype(jnp.float32)

    c3_out = params["c3_b"].shape[0]                   # 64
    fc1_out = params["f1_b"].shape[0]                  # 512
    # PyTorch flattens conv3 output as (c, p); our kernel produces (p, c) rows.
    f1 = params["f1_w"].reshape(fc1_out, c3_out, P)    # (512, 64, P)
    w1 = f1.transpose(2, 1, 0).reshape(P * c3_out, fc1_out).astype(jnp.bfloat16)

    w2 = jnp.pad(params["f2_w"].T,
                 ((0, 0), (0, NPAD - num_actions))).astype(jnp.bfloat16)   # (512, 128)
    b2 = jnp.pad(params["f2_b"], (0, NPAD - num_actions)).reshape(1, NPAD).astype(jnp.float32)

    return {
        "c1_w": conv_weight(params["c1_w"]), "c1_b": bias2d(params["c1_b"]),
        "c2_w": conv_weight(params["c2_w"]), "c2_b": bias2d(params["c2_b"]),
        "c3_w": conv_weight(params["c3_w"]), "c3_b": bias2d(params["c3_b"]),
        "f1_w": w1,                          "f1_b": bias2d(params["f1_b"]),
        "f2_w": w2,                          "f2_b": b2,
    }


# -------------------------------- forward ---------------------------------- #
@functools.partial(jax.jit, static_argnames=("num_actions",))
def cnn_forward(prep, x, num_actions):
    """x: (B, C, H, W) NCHW float32 -> (B, num_actions) float32."""
    B = x.shape[0]
    x = x.transpose(0, 2, 3, 1).astype(jnp.bfloat16)   # NCHW -> NHWC once, bf16 once

    # conv1 + ReLU  (Cout = 32, unpadded)
    col, Ho, Wo = _im2col_nhwc(x, 8, 4)
    y = matmul_bias_relu(col, prep["c1_w"], prep["c1_b"]).reshape(B, Ho, Wo, -1)

    # conv2 + ReLU  (K = 4*4*32 = 512, Cout = 64)
    col, Ho, Wo = _im2col_nhwc(y, 4, 2)
    y = matmul_bias_relu(col, prep["c2_w"], prep["c2_b"]).reshape(B, Ho, Wo, -1)

    # conv3 + ReLU as ONE large-M matmul over all (batch, spatial) rows (K = 9*64 = 576)
    col, Ho, Wo = _im2col_nhwc(y, 3, 1)
    y = matmul_bias_relu(col, prep["c3_w"], prep["c3_b"])          # (B*P, 64) bf16

    # flatten (p, c) -> fused FC1 + ReLU + FC2 (FC1 is one long-K matmul)
    feats = y.reshape(B, -1)                                       # free, contiguous
    out = fc_head(feats, prep["f1_w"], prep["f1_b"], prep["f2_w"], prep["f2_b"])
    return out[:, :num_actions]


# ----------------------------- pure-JAX reference --------------------------- #
@jax.jit
def cnn_reference(params, x):
    dn = ("NCHW", "OIHW", "NCHW")
    h = lax.conv_general_dilated(x, params["c1_w"], (4, 4), "VALID", dimension_numbers=dn)
    h = jnp.maximum(h + params["c1_b"][None, :, None, None], 0.0)
    h = lax.conv_general_dilated(h, params["c2_w"], (2, 2), "VALID", dimension_numbers=dn)
    h = jnp.maximum(h + params["c2_b"][None, :, None, None], 0.0)
    h = lax.conv_general_dilated(h, params["c3_w"], (1, 1), "VALID", dimension_numbers=dn)
    h = jnp.maximum(h + params["c3_b"][None, :, None, None], 0.0)
    h = h.reshape(x.shape[0], -1)
    h = jnp.maximum(h @ params["f1_w"].T + params["f1_b"], 0.0)
    return h @ params["f2_w"].T + params["f2_b"]


# ----------------------------------- main ----------------------------------- #
if __name__ == "__main__":
    input_shape = (4, 36, 36)   # (C, H, W): smallest spatial valid for k8/s4, k4/s2, k3/s1
    num_actions = 6
    batch = 2

    key = jax.random.PRNGKey(0)
    pkey, xkey = jax.random.split(key)
    params, feat = init_params(pkey, input_shape, num_actions)
    prep = prepare_params(params, input_shape, num_actions)

    x = jax.random.normal(xkey, (batch,) + input_shape, dtype=jnp.float32)

    out = jax.block_until_ready(cnn_forward(prep, x, num_actions))
    ref = jax.block_until_ready(cnn_reference(params, x))

    assert out.shape == (batch, num_actions), out.shape
    # bf16 matmul operands (f32 accumulation) vs a pure-f32 reference.
    err = float(jnp.max(jnp.abs(out - ref)))
    assert jnp.allclose(out, ref, atol=3e-2, rtol=3e-2), f"mismatch vs reference, max|diff|={err}"
    print("KERNEL_OK")
</pallas_src>

<mosaic_0001>
module attributes {stable_mosaic.version = 11 : i64} {
  func.func @_mm_bias_relu_kernel(%arg0: i32, %arg1: memref<64x256xbf16, #tpu.memory_space<vmem>>, %arg2: memref<256x32xbf16, #tpu.memory_space<vmem>>, %arg3: memref<1x32xf32, #tpu.memory_space<vmem>>, %arg4: memref<64x32xbf16, #tpu.memory_space<vmem>>) attributes {dimension_semantics = [#tpu.dimension_semantics<parallel>], iteration_bounds = array<i64: 2>, scalar_prefetch = 0 : i64, scratch_operands = 0 : i64, tpu.core_type = #tpu.core_type<tc>, window_params = [{transform_indices = @transform_0, window_bounds = array<i64: 64, 256>}, {pipeline_mode = #tpu.pipeline_mode<synchronous>, transform_indices = @transform_1, window_bounds = array<i64: 256, 32>}, {pipeline_mode = #tpu.pipeline_mode<synchronous>, transform_indices = @transform_2, window_bounds = array<i64: 1, 32>}, {transform_indices = @transform_3, window_bounds = array<i64: 64, 32>}]} {
    %c0 = arith.constant 0 : index
    %c0_0 = arith.constant 0 : index
    %0 = vector.load %arg1[%c0, %c0_0] : memref<64x256xbf16, #tpu.memory_space<vmem>>, vector<64x256xbf16>
    %c0_1 = arith.constant 0 : index
    %c0_2 = arith.constant 0 : index
    %1 = vector.load %arg2[%c0_1, %c0_2] : memref<256x32xbf16, #tpu.memory_space<vmem>>, vector<256x32xbf16>
    %cst = arith.constant dense<0.000000e+00> : vector<64x32xf32>
    %2 = tpu.matmul %0, %1, %cst {dimension_numbers = #tpu.dot_dimension_numbers<[1], [0], [0], [1], [0, 0, 1, 1], [], []>} : vector<64x256xbf16>, vector<256x32xbf16>, vector<64x32xf32> -> vector<64x32xf32>
    %c0_3 = arith.constant 0 : index
    %c0_4 = arith.constant 0 : index
    %3 = vector.load %arg3[%c0_3, %c0_4] : memref<1x32xf32, #tpu.memory_space<vmem>>, vector<1x32xf32>
    %4 = vector.broadcast %3 : vector<1x32xf32> to vector<64x32xf32>
    %5 = arith.addf %2, %4 : vector<64x32xf32>
    %cst_5 = arith.constant 0.000000e+00 : f32
    %6 = vector.broadcast %cst_5 : f32 to vector<64x32xf32>
    %7 = arith.maximumf %5, %6 : vector<64x32xf32>
    %8 = arith.truncf %7 : vector<64x32xf32> to vector<64x32xbf16>
    %c0_6 = arith.constant 0 : index
    %c0_7 = arith.constant 0 : index
    %9 = vector.load %arg4[%c0_6, %c0_7] : memref<64x32xbf16, #tpu.memory_space<vmem>>, vector<64x32xbf16>
    tpu.vector_store %arg4[%c0_6, %c0_7], %8 {strides = array<i32>} : memref<64x32xbf16, #tpu.memory_space<vmem>>, vector<64x32xbf16>,
    return
  }
  func.func @transform_0(%arg0: i32) -> (i32, i32) {
    %c0_i32 = arith.constant 0 : i32
    %c0_i32_0 = arith.constant 0 : i32
    return %arg0, %c0_i32 : i32, i32
  }
  func.func @transform_1(%arg0: i32) -> (i32, i32) {
    %c0_i32 = arith.constant 0 : i32
    %c0_i32_0 = arith.constant 0 : i32
    %c0_i32_1 = arith.constant 0 : i32
    return %c0_i32, %c0_i32_0 : i32, i32
  }
  func.func @transform_2(%arg0: i32) -> (i32, i32) {
    %c0_i32 = arith.constant 0 : i32
    %c0_i32_0 = arith.constant 0 : i32
    %c0_i32_1 = arith.constant 0 : i32
    return %c0_i32, %c0_i32_0 : i32, i32
  }
  func.func @transform_3(%arg0: i32) -> (i32, i32) {
    %c0_i32 = arith.constant 0 : i32
    %c0_i32_0 = arith.constant 0 : i32
    return %arg0, %c0_i32 : i32, i32
  }
}

module attributes {stable_mosaic.version = 11 : i64} {
  func.func @_mm_bias_relu_kernel(%arg0: i32, %arg1: memref<18x512xbf16, #tpu.memory_space<vmem>>, %arg2: memref<512x64xbf16, #tpu.memory_space<vmem>>, %arg3: memref<1x64xf32, #tpu.memory_space<vmem>>, %arg4: memref<18x64xbf16, #tpu.memory_space<vmem>>) attributes {dimension_semantics = [#tpu.dimension_semantics<parallel>], iteration_bounds = array<i64: 1>, scalar_prefetch = 0 : i64, scratch_operands = 0 : i64, tpu.core_type = #tpu.core_type<tc>, window_params = [{transform_indices = @transform_0, window_bounds = array<i64: 18, 512>}, {pipeline_mode = #tpu.pipeline_mode<synchronous>, transform_indices = @transform_1, window_bounds = array<i64: 512, 64>}, {pipeline_mode = #tpu.pipeline_mode<synchronous>, transform_indices = @transform_2, window_bounds = array<i64: 1, 64>}, {transform_indices = @transform_3, window_bounds = array<i64: 18, 64>}]} {
    %c0 = arith.constant 0 : index
    %c0_0 = arith.constant 0 : index
    %0 = vector.load %arg1[%c0, %c0_0] : memref<18x512xbf16, #tpu.memory_space<vmem>>, vector<18x512xbf16>
    %c0_1 = arith.constant 0 : index
    %c0_2 = arith.constant 0 : index
    %1 = vector.load %arg2[%c0_1, %c0_2] : memref<512x64xbf16, #tpu.memory_space<vmem>>, vector<512x64xbf16>
    %cst = arith.constant dense<0.000000e+00> : vector<18x64xf32>
    %2 = tpu.matmul %0, %1, %cst {dimension_numbers = #tpu.dot_dimension_numbers<[1], [0], [0], [1], [0, 0, 1, 1], [], []>} : vector<18x512xbf16>, vector<512x64xbf16>, vector<18x64xf32> -> vector<18x64xf32>
    %c0_3 = arith.constant 0 : index
    %c0_4 = arith.constant 0 : index
    %3 = vector.load %arg3[%c0_3, %c0_4] : memref<1x64xf32, #tpu.memory_space<vmem>>, vector<1x64xf32>
    %4 = vector.broadcast %3 : vector<1x64xf32> to vector<18x64xf32>
    %5 = arith.addf %2, %4 : vector<18x64xf32>
    %cst_5 = arith.constant 0.000000e+00 : f32
    %6 = vector.broadcast %cst_5 : f32 to vector<18x64xf32>
    %7 = arith.maximumf %5, %6 : vector<18x64xf32>
    %8 = arith.truncf %7 : vector<18x64xf32> to vector<18x64xbf16>
    %c0_6 = arith.constant 0 : index
    %c0_7 = arith.constant 0 : index
    %9 = vector.load %arg4[%c0_6, %c0_7] : memref<18x64xbf16, #tpu.memory_space<vmem>>, vector<18x64xbf16>
    tpu.vector_store %arg4[%c0_6, %c0_7], %8 {strides = array<i32>} : memref<18x64xbf16, #tpu.memory_space<vmem>>, vector<18x64xbf16>,
    return
  }
  func.func @transform_0(%arg0: i32) -> (i32, i32) {
    %c0_i32 = arith.constant 0 : i32
    %c0_i32_0 = arith.constant 0 : i32
    return %arg0, %c0_i32 : i32, i32
  }
  func.func @transform_1(%arg0: i32) -> (i32, i32) {
    %c0_i32 = arith.constant 0 : i32
    %c0_i32_0 = arith.constant 0 : i32
    %c0_i32_1 = arith.constant 0 : i32
    return %c0_i32, %c0_i32_0 : i32, i32
  }
  func.func @transform_2(%arg0: i32) -> (i32, i32) {
    %c0_i32 = arith.constant 0 : i32
    %c0_i32_0 = arith.constant 0 : i32
    %c0_i32_1 = arith.constant 0 : i32
    return %c0_i32, %c0_i32_0 : i32, i32
  }
  func.func @transform_3(%arg0: i32) -> (i32, i32) {
    %c0_i32 = arith.constant 0 : i32
    %c0_i32_0 = arith.constant 0 : i32
    return %arg0, %c0_i32 : i32, i32
  }
}

module attributes {stable_mosaic.version = 11 : i64} {
  func.func @_mm_bias_relu_kernel(%arg0: i32, %arg1: memref<2x576xbf16, #tpu.memory_space<vmem>>, %arg2: memref<576x64xbf16, #tpu.memory_space<vmem>>, %arg3: memref<1x64xf32, #tpu.memory_space<vmem>>, %arg4: memref<2x64xbf16, #tpu.memory_space<vmem>>) attributes {dimension_semantics = [#tpu.dimension_semantics<parallel>], iteration_bounds = array<i64: 1>, scalar_prefetch = 0 : i64, scratch_operands = 0 : i64, tpu.core_type = #tpu.core_type<tc>, window_params = [{transform_indices = @transform_0, window_bounds = array<i64: 2, 576>}, {pipeline_mode = #tpu.pipeline_mode<synchronous>, transform_indices = @transform_1, window_bounds = array<i64: 576, 64>}, {pipeline_mode = #tpu.pipeline_mode<synchronous>, transform_indices = @transform_2, window_bounds = array<i64: 1, 64>}, {transform_indices = @transform_3, window_bounds = array<i64: 2, 64>}]} {
    %c0 = arith.constant 0 : index
    %c0_0 = arith.constant 0 : index
    %0 = vector.load %arg1[%c0, %c0_0] : memref<2x576xbf16, #tpu.memory_space<vmem>>, vector<2x576xbf16>
    %c0_1 = arith.constant 0 : index
    %c0_2 = arith.constant 0 : index
    %1 = vector.load %arg2[%c0_1, %c0_2] : memref<576x64xbf16, #tpu.memory_space<vmem>>, vector<576x64xbf16>
    %cst = arith.constant dense<0.000000e+00> : vector<2x64xf32>
    %2 = tpu.matmul %0, %1, %cst {dimension_numbers = #tpu.dot_dimension_numbers<[1], [0], [0], [1], [0, 0, 1, 1], [], []>} : vector<2x576xbf16>, vector<576x64xbf16>, vector<2x64xf32> -> vector<2x64xf32>
    %c0_3 = arith.constant 0 : index
    %c0_4 = arith.constant 0 : index
    %3 = vector.load %arg3[%c0_3, %c0_4] : memref<1x64xf32, #tpu.memory_space<vmem>>, vector<1x64xf32>
    %4 = vector.broadcast %3 : vector<1x64xf32> to vector<2x64xf32>
    %5 = arith.addf %2, %4 : vector<2x64xf32>
    %cst_5 = arith.constant 0.000000e+00 : f32
    %6 = vector.broadcast %cst_5 : f32 to vector<2x64xf32>
    %7 = arith.maximumf %5, %6 : vector<2x64xf32>
    %8 = arith.truncf %7 : vector<2x64xf32> to vector<2x64xbf16>
    %c0_6 = arith.constant 0 : index
    %c0_7 = arith.constant 0 : index
    %9 = vector.load %arg4[%c0_6, %c0_7] : memref<2x64xbf16, #tpu.memory_space<vmem>>, vector<2x64xbf16>
    tpu.vector_store %arg4[%c0_6, %c0_7], %8 {strides = array<i32>} : memref<2x64xbf16, #tpu.memory_space<vmem>>, vector<2x64xbf16>,
    return
  }
  func.func @transform_0(%arg0: i32) -> (i32, i32) {
    %c0_i32 = arith.constant 0 : i32
    %c0_i32_0 = arith.constant 0 : i32
    return %arg0, %c0_i32 : i32, i32
  }
  func.func @transform_1(%arg0: i32) -> (i32, i32) {
    %c0_i32 = arith.constant 0 : i32
    %c0_i32_0 = arith.constant 0 : i32
    %c0_i32_1 = arith.constant 0 : i32
    return %c0_i32, %c0_i32_0 : i32, i32
  }
  func.func @transform_2(%arg0: i32) -> (i32, i32) {
    %c0_i32 = arith.constant 0 : i32
    %c0_i32_0 = arith.constant 0 : i32
    %c0_i32_1 = arith.constant 0 : i32
    return %c0_i32, %c0_i32_0 : i32, i32
  }
  func.func @transform_3(%arg0: i32) -> (i32, i32) {
    %c0_i32 = arith.constant 0 : i32
    %c0_i32_0 = arith.constant 0 : i32
    return %arg0, %c0_i32 : i32, i32
  }
}

module attributes {stable_mosaic.version = 11 : i64} {
  func.func @_fc_head_kernel(%arg0: i32, %arg1: memref<2x64xbf16, #tpu.memory_space<vmem>>, %arg2: memref<64x512xbf16, #tpu.memory_space<vmem>>, %arg3: memref<1x512xf32, #tpu.memory_space<vmem>>, %arg4: memref<512x128xbf16, #tpu.memory_space<vmem>>, %arg5: memref<1x128xf32, #tpu.memory_space<vmem>>, %arg6: memref<2x128xf32, #tpu.memory_space<vmem>>) attributes {dimension_semantics = [#tpu.dimension_semantics<parallel>], iteration_bounds = array<i64: 1>, scalar_prefetch = 0 : i64, scratch_operands = 0 : i64, tpu.core_type = #tpu.core_type<tc>, window_params = [{transform_indices = @transform_0, window_bounds = array<i64: 2, 64>}, {pipeline_mode = #tpu.pipeline_mode<synchronous>, transform_indices = @transform_1, window_bounds = array<i64: 64, 512>}, {pipeline_mode = #tpu.pipeline_mode<synchronous>, transform_indices = @transform_2, window_bounds = array<i64: 1, 512>}, {pipeline_mode = #tpu.pipeline_mode<synchronous>, transform_indices = @transform_3, window_bounds = array<i64: 512, 128>}, {pipeline_mode = #tpu.pipeline_mode<synchronous>, transform_indices = @transform_4, window_bounds = array<i64: 1, 128>}, {transform_indices = @transform_5, window_bounds = array<i64: 2, 128>}]} {
    %c0 = arith.constant 0 : index
    %c0_0 = arith.constant 0 : index
    %0 = vector.load %arg1[%c0, %c0_0] : memref<2x64xbf16, #tpu.memory_space<vmem>>, vector<2x64xbf16>
    %c0_1 = arith.constant 0 : index
    %c0_2 = arith.constant 0 : index
    %1 = vector.load %arg2[%c0_1, %c0_2] : memref<64x512xbf16, #tpu.memory_space<vmem>>, vector<64x512xbf16>
    %cst = arith.constant dense<0.000000e+00> : vector<2x512xf32>
    %2 = tpu.matmul %0, %1, %cst {dimension_numbers = #tpu.dot_dimension_numbers<[1], [0], [0], [1], [0, 0, 1, 1], [], []>} : vector<2x64xbf16>, vector<64x512xbf16>, vector<2x512xf32> -> vector<2x512xf32>
    %c0_3 = arith.constant 0 : index
    %c0_4 = arith.constant 0 : index
    %3 = vector.load %arg3[%c0_3, %c0_4] : memref<1x512xf32, #tpu.memory_space<vmem>>, vector<1x512xf32>
    %4 = vector.broadcast %3 : vector<1x512xf32> to vector<2x512xf32>
    %5 = arith.addf %2, %4 : vector<2x512xf32>
    %cst_5 = arith.constant 0.000000e+00 : f32
    %6 = vector.broadcast %cst_5 : f32 to vector<2x512xf32>
    %7 = arith.maximumf %5, %6 : vector<2x512xf32>
    %8 = arith.truncf %7 : vector<2x512xf32> to vector<2x512xbf16>
    %c0_6 = arith.constant 0 : index
    %c0_7 = arith.constant 0 : index
    %9 = vector.load %arg4[%c0_6, %c0_7] : memref<512x128xbf16, #tpu.memory_space<vmem>>, vector<512x128xbf16>
    %cst_8 = arith.constant dense<0.000000e+00> : vector<2x128xf32>
    %10 = tpu.matmul %8, %9, %cst_8 {dimension_numbers = #tpu.dot_dimension_numbers<[1], [0], [0], [1], [0, 0, 1, 1], [], []>} : vector<2x512xbf16>, vector<512x128xbf16>, vector<2x128xf32> -> vector<2x128xf32>
    %c0_9 = arith.constant 0 : index
    %c0_10 = arith.constant 0 : index
    %11 = vector.load %arg5[%c0_9, %c0_10] : memref<1x128xf32, #tpu.memory_space<vmem>>, vector<1x128xf32>
    %12 = vector.broadcast %11 : vector<1x128xf32> to vector<2x128xf32>
    %13 = arith.addf %10, %12 : vector<2x128xf32>
    %c0_11 = arith.constant 0 : index
    %c0_12 = arith.constant 0 : index
    %14 = vector.load %arg6[%c0_11, %c0_12] : memref<2x128xf32, #tpu.memory_space<vmem>>, vector<2x128xf32>
    tpu.vector_store %arg6[%c0_11, %c0_12], %13 {strides = array<i32>} : memref<2x128xf32, #tpu.memory_space<vmem>>, vector<2x128xf32>,
    return
  }
  func.func @transform_0(%arg0: i32) -> (i32, i32) {
    %c0_i32 = arith.constant 0 : i32
    %c0_i32_0 = arith.constant 0 : i32
    return %arg0, %c0_i32 : i32, i32
  }
  func.func @transform_1(%arg0: i32) -> (i32, i32) {
    %c0_i32 = arith.constant 0 : i32
    %c0_i32_0 = arith.constant 0 : i32
    %c0_i32_1 = arith.constant 0 : i32
    return %c0_i32, %c0_i32_0 : i32, i32
  }
  func.func @transform_2(%arg0: i32) -> (i32, i32) {
    %c0_i32 = arith.constant 0 : i32
    %c0_i32_0 = arith.constant 0 : i32
    %c0_i32_1 = arith.constant 0 : i32
    return %c0_i32, %c0_i32_0 : i32, i32
  }
  func.func @transform_3(%arg0: i32) -> (i32, i32) {
    %c0_i32 = arith.constant 0 : i32
    %c0_i32_0 = arith.constant 0 : i32
    %c0_i32_1 = arith.constant 0 : i32
    return %c0_i32, %c0_i32_0 : i32, i32
  }
  func.func @transform_4(%arg0: i32) -> (i32, i32) {
    %c0_i32 = arith.constant 0 : i32
    %c0_i32_0 = arith.constant 0 : i32
    %c0_i32_1 = arith.constant 0 : i32
    return %c0_i32, %c0_i32_0 : i32, i32
  }
  func.func @transform_5(%arg0: i32) -> (i32, i32) {
    %c0_i32 = arith.constant 0 : i32
    %c0_i32_0 = arith.constant 0 : i32
    return %arg0, %c0_i32 : i32, i32
  }
}

</mosaic_0001>

<bundles_post_ra>
// kernel: cnn_forward.4
= control target key start
LH: loop header
LB: loop body
LE: loop exit
PB: predicated region body
PF: predicated region fallthrough
CT: control target
= control target key end

     0   :  { %s705_s12 = smov 0   ;;  %s805_s0 = inlined_call_operand.vmem [shape: bf16[128,256], index: 0, kind: input, shape index: {}]   ;;  %s806_s1 = inlined_call_operand.vmem [shape: bf16[256,32], index: 1, kind: input, shape index: {}]   ;;  %s807_s2 = inlined_call_operand.vmem [shape: f32[1,32], index: 2, kind: input, shape index: {}]   ;;  %s808_s3 = inlined_call_operand.vmem [shape: bf16[128,32], index: 3, kind: output, shape index: {}]  }
   0x1 LB: > { %s531_s13 = sadd.s32 4294967295, %s683_s12   ;;  %p535_p0 = scmp.ge.s32.totalorder %s683_s12, 1  ;;  %s683_s12 = sphi %s705_s12, %s13_s12  }
   0x2   : > { %p139_p1 = scmp.lt.s32.totalorder %s683_s12, 3 }
   0x4   : > { %p140_p2 = pnand %p535_p0, %p139_p1 }
   0x5   : > { %v649_v0 = vld [vmem:[%s806_s1 + $0x40] sm:$0xff] (!%p140_p2)   ;;  %s536_s16 = sshll.u32 (!%p140_p2), %s531_s13, 3  ;;  %v651_v2 = vld [vmem:[%s806_s1 + $0x48] sm:$0xff] (!%p140_p2)   ;;  %v653_v4 = vld [vmem:[%s806_s1 + $0x50] sm:$0xff] (!%p140_p2)   ;;  %vm466_vm0 = vcmask (!%p140_p2), 257024  }
   0x6   : > { %143 = sbr.rel (%p140_p2) target bundleno = 270 (0x10e), region = 32  ;;  %v650_v1 = vld [vmem:[%s806_s1] sm:$0xff] (!%p140_p2)   ;;  %585 = vmatprep.subr.bf16.mxu0 (!%p140_p2), %v649_v0  ;;  %625 = vmatprep.subr.bf16.mxu1 (!%p140_p2), %v649_v0  ;;  %v652_v3 = vld [vmem:[%s806_s1 + $0x8] sm:$0xff] (!%p140_p2)   ;;  %p165_p3 = scmp.lt.s32.totalorder (!%p140_p2), %s536_s16, 15  ;;  %v654_v5 = vld [vmem:[%s806_s1 + $0x10] sm:$0xff] (!%p140_p2)  }
   0x7   : > { %586 = vmatpush3.bf16.msra.mxu0 (!%p140_p2), %v650_v1  ;;  %633 = vmatpush3.bf16.msra.mxu1 (!%p140_p2), %v650_v1  ;;  %v655_v6 = vld [vmem:[%s806_s1 + $0x58] sm:$0xff] (!%p140_p2)   ;;  %v657_v8 = vld [vmem:[%s806_s1 + $0x60] sm:$0xff] (!%p140_p2)   ;;  %v659_v10 = vld [vmem:[%s806_s1 + $0x68] sm:$0xff] (!%p140_p2)  }
   0x8   : > { %587 = vmatprep.subr.bf16.mxu0 (!%p140_p2), %v651_v2  ;;  %626 = vmatprep.subr.bf16.mxu1 (!%p140_p2), %v651_v2  ;;  %v656_v7 = vld [vmem:[%s806_s1 + $0x18] sm:$0xff] (!%p140_p2)   ;;  %v658_v9 = vld [vmem:[%s806_s1 + $0x20] sm:$0xff] (!%p140_p2)   ;;  %v660_v13 = vld [vmem:[%s806_s1 + $0x28] sm:$0xff] (!%p140_p2)  }
   0x9   : > { %v661_v14 = vld [vmem:[%s806_s1 + $0x70] sm:$0xff] (!%p140_p2)   ;;  %v663_v16 = vld [vmem:[%s806_s1 + $0x78] sm:$0xff] (!%p140_p2)   ;;  %v541_v26 = vld [vmem:[%s807_s2] ss:$0 sm:$0xff] (!%p140_p2) }
   0xa   : > { %v662_v15 = vld [vmem:[%s806_s1 + $0x30] sm:$0xff] (!%p140_p2)   ;;  %v664_v17 = vld [vmem:[%s806_s1 + $0x38] sm:$0xff] (!%p140_p2)  }
   0xb   : > { %588 = vmatpush3.bf16.msra.mxu0 (!%p140_p2), %v652_v3  ;;  %634 = vmatpush3.bf16.msra.mxu1 (!%p140_p2), %v652_v3 }
   0xc   : > { %589 = vmatprep.subr.bf16.mxu0 (!%p140_p2), %v653_v4  ;;  %627 = vmatprep.subr.bf16.mxu1 (!%p140_p2), %v653_v4 }
   0xd   : > { %s810_s16 = smov (!%p165_p3, %s536_s16), 15 }
   0xe   : > { %s576_s4 = sshll.u32 %s810_s16, 3  ;;  %s540_s28 = sshll.u32 %s810_s16, 2 }
   0xf   : > { %590 = vmatpush3.bf16.msra.mxu0 %v654_v5  ;;  %635 = vmatpush3.bf16.msra.mxu1 %v654_v5  ;;  %s746_s9 = scalar_lea.vmem %s805_s0, %s576_s4  ;;  %s784_s4 = scalar_lea.vmem %s808_s3, %s540_s28 }
  0x10   : > { %591 = vmatprep.subr.bf16.mxu0 %v655_v6  ;;  %628 = vmatprep.subr.bf16.mxu1 %v655_v6  ;;  %v667_v11 = vld [vmem:[%s746_s9 + $0x4] ss:$8 sps:$4 sm:$0xff]   ;;  %v665_v18 = vld [vmem:[%s746_s9] ss:$8 sps:$4 sm:$0xff]   ;;  %v671_v20 = vld [vmem:[%s746_s9 + $0x14] ss:$8 sps:$4 sm:$0xff]  }
  0x11   : > { %v670_v12 = vld [vmem:[%s746_s9 + $0x24] ss:$8 sps:$4 sm:$0xff]   ;;  %393 = vmatprep.mubr.bf16.mxu0 %v667_v11  ;;  %v668_v19 = vld [vmem:[%s746_s9 + $0x20] ss:$8 sps:$4 sm:$0xff]   ;;  %v673_v21 = vld [vmem:[%s746_s9 + $0x34] ss:$8 sps:$4 sm:$0xff]  }
  0x12   : > { %409 = vmatprep.mubr.bf16.mxu1 %v670_v12  ;;  %v675_v22 = vld [vmem:[%s746_s9 + $0x10] ss:$8 sps:$4 sm:$0xff]  }
  0x13   : > { %592 = vmatpush3.bf16.msra.mxu0 %v656_v7  ;;  %636 = vmatpush3.bf16.msra.mxu1 %v656_v7  ;;  %v676_v23 = vld [vmem:[%s746_s9 + $0x30] ss:$8 sps:$4 sm:$0xff]  }
  0x14   : > { %593 = vmatprep.subr.bf16.mxu0 %v657_v8  ;;  %629 = vmatprep.subr.bf16.mxu1 %v657_v8 }
  0x17   : > { %594 = vmatpush3.bf16.msra.mxu0 %v658_v9  ;;  %637 = vmatpush3.bf16.msra.mxu1 %v658_v9 }
  0x18   : > { %595 = vmatprep.subr.bf16.mxu0 %v659_v10  ;;  %630 = vmatprep.subr.bf16.mxu1 %v659_v10 }
  0x1b   : > { %596 = vmatpush3.bf16.msra.mxu0 %v660_v13  ;;  %638 = vmatpush3.bf16.msra.mxu1 %v660_v13 }
  0x1c   : > { %597 = vmatprep.subr.bf16.mxu0 %v661_v14  ;;  %631 = vmatprep.subr.bf16.mxu1 %v661_v14 }
  0x1f   : > { %598 = vmatpush3.bf16.msra.mxu0 %v662_v15  ;;  %639 = vmatpush3.bf16.msra.mxu1 %v662_v15 }
  0x20   : > { %599 = vmatprep.subr.bf16.mxu0 %v663_v16  ;;  %632 = vmatprep.subr.bf16.mxu1 %v663_v16 }
  0x23   : > { %600 = vmatpush3.bf16.msra.mxu0 %v664_v17  ;;  %640 = vmatpush3.bf16.msra.mxu1 %v664_v17 }
  0x26   : > { %394 = vmatmul.mubr.bf16.vlgmr.msra.gmra.mrb[0].mxu0 %v665_v18  ;;  %410 = vmatmul.mubr.bf16.vlgmr.msra.gmra.mrb[0].mxu1 %v668_v19 }
  0x27   : > { %401 = vmatprep.mubr.bf16.mxu0 %v671_v20  ;;  %417 = vmatprep.mubr.bf16.mxu1 %v673_v21 }
  0x2e   : > { %402 = vmatmul.mubr.bf16.gmra.mrb[4].mxu0 %v675_v22  ;;  %418 = vmatmul.mubr.bf16.gmra.mrb[4].mxu1 %v676_v23 }
  0xf9   : > { %v601_v24 = vpop.f32.mrb[0].mxu0  ;;  %v613_v25 = vpop.f32.mrb[0].mxu1 }
  0xfa   : > { %v602_v27 = vpop.f32.mrb[1].mxu0  ;;  %v614_v28 = vpop.f32.mrb[1].mxu1 }
  0xfb   : > { %v603_v29 = vadd.f32 %v602_v27, %v601_v24  ;;  %v615_v30 = vadd.f32 %v614_v28, %v613_v25  ;;  %v604_v31 = vpop.f32.mrb[2].mxu0  ;;  %v616_v32 = vpop.f32.mrb[2].mxu1 }
  0xfc   : > { %v605_v33 = vpop.f32.mrb[3].mxu0  ;;  %v617_v34 = vpop.f32.mrb[3].mxu1 }
  0xfd   : > { %v396_v35 = vadd.f32 %v603_v29, %v541_v26  ;;  %v412_v36 = vadd.f32 %v615_v30, %v541_v26  ;;  %v606_v37 = vadd.f32 %v605_v33, %v604_v31  ;;  %v618_v38 = vadd.f32 %v617_v34, %v616_v32 }
  0xff   : > { %v426_v39 = vmax.f32 %v396_v35, 0.0  ;;  %v430_v40 = vmax.f32 %v412_v36, 0.0  ;;  %v399_v41 = vadd.f32 %v606_v37, %v541_v26  ;;  %v415_v42 = vadd.f32 %v618_v38, %v541_v26 }
 0x101   : > { %v577_v43 = vpack.c.bf16 %v426_v39, %v426_v39  ;;  %v581_v44 = vpack.c.bf16 %v430_v40, %v430_v40  ;;  %v427_v45 = vmax.f32 %v399_v41, 0.0  ;;  %v431_v46 = vmax.f32 %v415_v42, 0.0  ;;  %v607_v47 = vpop.f32.mrb[4].mxu0  ;;  %v619_v48 = vpop.f32.mrb[4].mxu1 }
 0x102   : > { %v608_v49 = vpop.f32.mrb[5].mxu0  ;;  %v620_v50 = vpop.f32.mrb[5].mxu1 }
 0x103   : > { %467 = vst.msk [vmem:[%s784_s4] sm:$0xf] %vm466_vm0, %v577_v43  ;;  %471 = vst.msk [vmem:[%s784_s4 + $0x10] sm:$0xf] %vm466_vm0, %v581_v44  ;;  %v578_v51 = vpack.c.bf16 %v427_v45, %v427_v45  ;;  %v582_v52 = vpack.c.bf16 %v431_v46, %v431_v46  ;;  %v609_v53 = vadd.f32 %v608_v49, %v607_v47  ;;  %v610_v55 = vpop.f32.mrb[6].mxu0  ;;  %v622_v56 = vpop.f32.mrb[6].mxu1 }
 0x104   : > { %v621_v54 = vadd.f32 %v620_v50, %v619_v48  ;;  %v611_v57 = vpop.f32.mrb[7].mxu0  ;;  %v623_v58 = vpop.f32.mrb[7].mxu1 }
 0x105   : > { %468 = vst.msk [vmem:[%s784_s4 + $0x4] sm:$0xf] %vm466_vm0, %v578_v51  ;;  %472 = vst.msk [vmem:[%s784_s4 + $0x14] sm:$0xf] %vm466_vm0, %v582_v52  ;;  %v404_v59 = vadd.f32 %v609_v53, %v541_v26  ;;  %v612_v61 = vadd.f32 %v611_v57, %v610_v55  ;;  %v624_v62 = vadd.f32 %v623_v58, %v622_v56 }
 0x106   : > { %v420_v60 = vadd.f32 %v621_v54, %v541_v26 }
 0x107   : > { %v428_v63 = vmax.f32 %v404_v59, 0.0  ;;  %v407_v1 = vadd.f32 %v612_v61, %v541_v26  ;;  %v423_v2 = vadd.f32 %v624_v62, %v541_v26 }
 0x108   : > { %v432_v0 = vmax.f32 %v420_v60, 0.0 }
 0x109   : > { %v579_v3 = vpack.c.bf16 %v428_v63, %v428_v63  ;;  %v429_v5 = vmax.f32 %v407_v1, 0.0  ;;  %v433_v6 = vmax.f32 %v423_v2, 0.0 }
 0x10a   : > { %v583_v4 = vpack.c.bf16 %v432_v0, %v432_v0 }
 0x10b   : > { %469 = vst.msk [vmem:[%s784_s4 + $0x8] sm:$0xf] %vm466_vm0, %v579_v3  ;;  %v580_v7 = vpack.c.bf16 %v429_v5, %v429_v5  ;;  %v584_v8 = vpack.c.bf16 %v433_v6, %v433_v6 }
 0x10c   : > { %473 = vst.msk [vmem:[%s784_s4 + $0x18] sm:$0xf] %vm466_vm0, %v583_v4 }
 0x10d   : > { %470 = vst.msk [vmem:[%s784_s4 + $0xc] sm:$0xf] %vm466_vm0, %v580_v7  ;;  %474 = vst.msk [vmem:[%s784_s4 + $0x1c] sm:$0xf] %vm466_vm0, %v584_v8 }
 0x10e PF: > { %s13_s12 = sadd.s32 1, %s683_s12  }
 0x10f   : > { %p10_p4 = scmp.ge.s32.totalorder %s13_s12, 4  }
 0x111   :  { %12 = sbr.rel (!%p10_p4) target bundleno = 1 (0x1), region = 62 }

// kernel: cnn_forward.5
= control target key start
LH: loop header
LB: loop body
LE: loop exit
PB: predicated region body
PF: predicated region fallthrough
CT: control target
= control target key end

     0   :  { %vm430_vm0 = vcmask 519168   ;;  %vm433_vm1 = vcmask 516096   ;;  %s730_s1 = inlined_call_operand.vmem [shape: bf16[512,64], index: 1, kind: input, shape index: {}]   ;;  %s731_s0 = inlined_call_operand.vmem [shape: bf16[18,512], index: 0, kind: input, shape index: {}]   ;;  %s732_s2 = inlined_call_operand.vmem [shape: f32[1,64], index: 2, kind: input, shape index: {}]   ;;  %s733_s3 = inlined_call_operand.vmem [shape: bf16[18,64], index: 3, kind: output, shape index: {}]  }
   0x1   :  { %v542_v0 = vld [vmem:[%s730_s1 + $0x40] sm:$0xff]   ;;  %v546_v4 = vld [vmem:[%s730_s1 + $0x48] sm:$0xff]   ;;  %v550_v8 = vld [vmem:[%s730_s1 + $0x50] sm:$0xff]  }
   0x2   :  { %v543_v1 = vld [vmem:[%s730_s1 + $0xc0] sm:$0xff]   ;;  %486 = vmatprep.subr.bf16.mxu0 %v542_v0  ;;  %v547_v5 = vld [vmem:[%s730_s1 + $0xc8] sm:$0xff]   ;;  %v551_v9 = vld [vmem:[%s730_s1 + $0xd0] sm:$0xff]  }
   0x3   :  { %v544_v2 = vld [vmem:[%s730_s1] sm:$0xff]   ;;  %514 = vmatprep.subr.bf16.mxu1 %v543_v1  ;;  %v548_v6 = vld [vmem:[%s730_s1 + $0x8] sm:$0xff]   ;;  %v552_v10 = vld [vmem:[%s730_s1 + $0x10] sm:$0xff]  }
   0x4   :  { %v545_v3 = vld [vmem:[%s730_s1 + $0x80] sm:$0xff]   ;;  %487 = vmatpush3.bf16.msra.mxu0 %v544_v2  ;;  %v549_v7 = vld [vmem:[%s730_s1 + $0x88] sm:$0xff]   ;;  %v553_v11 = vld [vmem:[%s730_s1 + $0x90] sm:$0xff]  }
   0x5   :  { %515 = vmatpush3.bf16.msra.mxu1 %v545_v3  ;;  %488 = vmatprep.subr.bf16.mxu0 %v546_v4  ;;  %v554_v12 = vld [vmem:[%s730_s1 + $0x58] sm:$0xff]   ;;  %v558_v16 = vld [vmem:[%s730_s1 + $0x60] sm:$0xff]   ;;  %v562_v20 = vld [vmem:[%s730_s1 + $0x68] sm:$0xff]  }
   0x6   :  { %516 = vmatprep.subr.bf16.mxu1 %v547_v5  ;;  %v555_v13 = vld [vmem:[%s730_s1 + $0xd8] sm:$0xff]   ;;  %v559_v17 = vld [vmem:[%s730_s1 + $0xe0] sm:$0xff]   ;;  %v563_v21 = vld [vmem:[%s730_s1 + $0xe8] sm:$0xff]  }
   0x7   :  { %v556_v14 = vld [vmem:[%s730_s1 + $0x18] sm:$0xff]   ;;  %v560_v18 = vld [vmem:[%s730_s1 + $0x20] sm:$0xff]   ;;  %v564_v22 = vld [vmem:[%s730_s1 + $0x28] sm:$0xff]  }
   0x8   :  { %489 = vmatpush3.bf16.msra.mxu0 %v548_v6  ;;  %v557_v15 = vld [vmem:[%s730_s1 + $0x98] sm:$0xff]   ;;  %v561_v19 = vld [vmem:[%s730_s1 + $0xa0] sm:$0xff]   ;;  %v565_v23 = vld [vmem:[%s730_s1 + $0xa8] sm:$0xff]  }
   0x9   :  { %517 = vmatpush3.bf16.msra.mxu1 %v549_v7  ;;  %490 = vmatprep.subr.bf16.mxu0 %v550_v8  ;;  %v566_v24 = vld [vmem:[%s730_s1 + $0x70] sm:$0xff]   ;;  %v570_v28 = vld [vmem:[%s730_s1 + $0x78] sm:$0xff]   ;;  %v19_v36 = vld [vmem:[%s731_s0 + $0x20] sm:$0x11] }
   0xa   :  { %518 = vmatprep.subr.bf16.mxu1 %v551_v9  ;;  %v567_v25 = vld [vmem:[%s730_s1 + $0xf0] sm:$0xff]   ;;  %v571_v29 = vld [vmem:[%s730_s1 + $0xf8] sm:$0xff]   ;;  %v445_v37 = vcombine.high %v19_v36, %v19_v36  ;;  %v20_v38 = vld [vmem:[%s731_s0 + $0x28] sm:$0x11]  ;;  %v444_v40 = vcombine.low %v19_v36, %v19_v36 }
   0xb   :  { %v568_v26 = vld [vmem:[%s730_s1 + $0x30] sm:$0xff]   ;;  %v572_v30 = vld [vmem:[%s730_s1 + $0x38] sm:$0xff]   ;;  %v447_v39 = vcombine.high %v20_v38, %v20_v38  ;;  %v446_v41 = vcombine.low %v20_v38, %v20_v38  ;;  %v439_v44 = vld [vmem:[%s732_s2] ss:$0 sm:$0xff] }
   0xc   :  { %491 = vmatpush3.bf16.msra.mxu0 %v552_v10  ;;  %v569_v27 = vld [vmem:[%s730_s1 + $0xb0] sm:$0xff]   ;;  %v573_v31 = vld [vmem:[%s730_s1 + $0xb8] sm:$0xff]  }
   0xd   :  { %519 = vmatpush3.bf16.msra.mxu1 %v553_v11  ;;  %492 = vmatprep.subr.bf16.mxu0 %v554_v12  ;;  %v574_v32 = vld [vmem:[%s731_s0] ss:$16 sps:$4 sm:$0xff]   ;;  %v576_v33 = vld [vmem:[%s731_s0 + $0x4] ss:$16 sps:$4 sm:$0xff]   ;;  %v577_v34 = vld [vmem:[%s731_s0 + $0x8] ss:$16 sps:$4 sm:$0xff]  }
   0xe   :  { %520 = vmatprep.subr.bf16.mxu1 %v555_v13  ;;  %v579_v35 = vld [vmem:[%s731_s0 + $0xc] ss:$16 sps:$4 sm:$0xff]   ;;  %350 = vmatprep.mubr.bf16.mxu0 %v576_v33 }
   0xf   :  { %398 = vmatprep.mubr.bf16.mxu1 %v579_v35 }
  0x10   :  { %493 = vmatpush3.bf16.msra.mxu0 %v556_v14 }
  0x11   :  { %521 = vmatpush3.bf16.msra.mxu1 %v557_v15  ;;  %494 = vmatprep.subr.bf16.mxu0 %v558_v16 }
  0x12   :  { %522 = vmatprep.subr.bf16.mxu1 %v559_v17 }
  0x14   :  { %495 = vmatpush3.bf16.msra.mxu0 %v560_v18 }
  0x15   :  { %523 = vmatpush3.bf16.msra.mxu1 %v561_v19  ;;  %496 = vmatprep.subr.bf16.mxu0 %v562_v20 }
  0x16   :  { %524 = vmatprep.subr.bf16.mxu1 %v563_v21 }
  0x18   :  { %497 = vmatpush3.bf16.msra.mxu0 %v564_v22 }
  0x19   :  { %525 = vmatpush3.bf16.msra.mxu1 %v565_v23  ;;  %498 = vmatprep.subr.bf16.mxu0 %v566_v24 }
  0x1a   :  { %526 = vmatprep.subr.bf16.mxu1 %v567_v25 }
  0x1c   :  { %499 = vmatpush3.bf16.msra.mxu0 %v568_v26 }
  0x1d   :  { %527 = vmatpush3.bf16.msra.mxu1 %v569_v27  ;;  %500 = vmatprep.subr.bf16.mxu0 %v570_v28 }
  0x1e   :  { %528 = vmatprep.subr.bf16.mxu1 %v571_v29 }
  0x20   :  { %501 = vmatpush3.bf16.msra.mxu0 %v572_v30 }
  0x21   :  { %529 = vmatpush3.bf16.msra.mxu1 %v573_v31 }
  0x23   :  { %351 = vmatmul.mubr.bf16.vlgmr.msra.gmra.mrb[0].mxu0 %v574_v32 }
  0x24   :  { %399 = vmatmul.mubr.bf16.vlgmr.msra.gmra.mrb[0].mxu1 %v577_v34  ;;  %358 = vmatprep.mubr.bf16.mxu0 %v445_v37 }
  0x25   :  { %406 = vmatprep.mubr.bf16.mxu1 %v447_v39 }
  0x2b   :  { %359 = vmatmul.mubr.bf16.gmra.mrb[4].mxu0 %v444_v40 }
  0x2c   :  { %407 = vmatmul.mubr.bf16.gmra.mrb[4].mxu1 %v446_v41 }
  0xf6   :  { %v502_v42 = vpop.f32.mrb[0].mxu0 }
  0xf7   :  { %v530_v43 = vpop.f32.mrb[0].mxu1  ;;  %v503_v45 = vpop.f32.mrb[1].mxu0 }
  0xf8   :  { %v504_v46 = vadd.f32 %v503_v45, %v502_v42  ;;  %v531_v47 = vpop.f32.mrb[1].mxu1  ;;  %v505_v48 = vpop.f32.mrb[2].mxu0 }
  0xf9   :  { %v532_v49 = vadd.f32 %v531_v47, %v530_v43  ;;  %v533_v50 = vpop.f32.mrb[2].mxu1  ;;  %v506_v51 = vpop.f32.mrb[3].mxu0 }
  0xfa   :  { %v353_v52 = vadd.f32 %v504_v46, %v439_v44  ;;  %v507_v53 = vadd.f32 %v506_v51, %v505_v48  ;;  %v534_v54 = vpop.f32.mrb[3].mxu1 }
  0xfb   :  { %v535_v55 = vadd.f32 %v534_v54, %v533_v50 }
  0xfc   :  { %v401_v56 = vadd.f32 %v532_v49, %v353_v52  ;;  %v356_v57 = vadd.f32 %v507_v53, %v439_v44 }
  0xfe   :  { %v414_v58 = vmax.f32 %v401_v56, 0.0  ;;  %v404_v59 = vadd.f32 %v535_v55, %v356_v57  ;;  %v508_v60 = vpop.f32.mrb[4].mxu0 }
  0xff   :  { %v536_v61 = vpop.f32.mrb[4].mxu1  ;;  %v509_v62 = vpop.f32.mrb[5].mxu0 }
 0x100   :  { %v483_v63 = vpack.c.bf16 %v414_v58, %v414_v58  ;;  %v415_v0 = vmax.f32 %v404_v59, 0.0  ;;  %v510_v1 = vadd.f32 %v509_v62, %v508_v60  ;;  %v537_v2 = vpop.f32.mrb[5].mxu1  ;;  %v511_v3 = vpop.f32.mrb[6].mxu0 }
 0x101   :  { %v538_v4 = vadd.f32 %v537_v2, %v536_v61  ;;  %v539_v5 = vpop.f32.mrb[6].mxu1  ;;  %v512_v6 = vpop.f32.mrb[7].mxu0 }
 0x102   :  { %431 = vst.msk [vmem:[%s733_s3] sm:$0xf] %vm430_vm0, %v483_v63  ;;  %v484_v7 = vpack.c.bf16 %v415_v0, %v415_v0  ;;  %v361_v8 = vadd.f32 %v510_v1, %v439_v44  ;;  %v540_v9 = vpop.f32.mrb[7].mxu1 }
 0x104   :  { %432 = vst.msk [vmem:[%s733_s3 + $0x4] sm:$0xf] %vm430_vm0, %v484_v7  ;;  %v409_v10 = vadd.f32 %v538_v4, %v361_v8 }
 0x106   :  { %v416_v11 = vmax.f32 %v409_v10, 0.0 }
 0x108   :  { %v485_v12 = vpack.c.bf16 %v416_v11, %v416_v11 }
 0x10a   :  { %434 = vst.msk [vmem:[%s733_s3 + $0x8] sm:$0x1] %vm433_vm1, %v485_v12 }

// kernel: cnn_forward.6
= control target key start
LH: loop header
LB: loop body
LE: loop exit
PB: predicated region body
PF: predicated region fallthrough
CT: control target
= control target key end

     0   :  { %v626_v21 = vmov 1966171168   ;;  %v100_v23 = vlaneseq  ;;  %v627_v40 = vmov 0.0   ;;  %vm628_vm0 = vmmov 0   ;;  %s766_s1 = inlined_call_operand.vmem [shape: bf16[576,64], index: 1, kind: input, shape index: {}]   ;;  %s767_s0 = inlined_call_operand.vmem [shape: bf16[2,576], index: 0, kind: input, shape index: {}]   ;;  %s768_s2 = inlined_call_operand.vmem [shape: f32[1,64], index: 2, kind: input, shape index: {}]   ;;  %s769_s3 = inlined_call_operand.vmem [shape: bf16[2,64], index: 3, kind: output, shape index: {}]  }
   0x1   :  { %v589_v0 = vld [vmem:[%s766_s1 + $0x40] sm:$0xff]   ;;  %v593_v4 = vld [vmem:[%s766_s1 + $0x48] sm:$0xff]   ;;  %v597_v8 = vld [vmem:[%s766_s1 + $0x50] sm:$0xff]   ;;  %v98_v22 = vunpack.c.l.s4 %v626_v21  ;;  %vm355_vm1 = vcmask 523264   ;;  %vm481_vm2 = vcmask 516096  }
   0x2   :  { %v590_v1 = vld [vmem:[%s766_s1] sm:$0xff]   ;;  %525 = vmatprep.subr.bf16.mxu0 %v589_v0  ;;  %v594_v5 = vld [vmem:[%s766_s1 + $0x8] sm:$0xff]   ;;  %v598_v9 = vld [vmem:[%s766_s1 + $0x10] sm:$0xff]   ;;  %v101_v29 = vshrl.u32 %v100_v23, 7 }
   0x3   :  { %v591_v2 = vld [vmem:[%s766_s1 + $0xc0] sm:$0xff]   ;;  %526 = vmatpush3.bf16.msra.mxu0 %v590_v1  ;;  %v595_v6 = vld [vmem:[%s766_s1 + $0xc8] sm:$0xff]   ;;  %v599_v10 = vld [vmem:[%s766_s1 + $0xd0] sm:$0xff]   ;;  %v99_v28 = vunpack.c.0.s8 %v98_v22 }
   0x4   :  { %v592_v3 = vld [vmem:[%s766_s1 + $0x80] sm:$0xff]   ;;  %547 = vmatprep.subr.bf16.mxu1 %v591_v2  ;;  %527 = vmatprep.subr.bf16.mxu0 %v593_v4  ;;  %v596_v7 = vld [vmem:[%s766_s1 + $0x88] sm:$0xff]   ;;  %v600_v11 = vld [vmem:[%s766_s1 + $0x90] sm:$0xff]  }
   0x5   :  { %548 = vmatpush3.bf16.msra.mxu1 %v592_v3  ;;  %v601_v12 = vld [vmem:[%s766_s1 + $0x58] sm:$0xff]   ;;  %v605_v16 = vld [vmem:[%s766_s1 + $0x60] sm:$0xff]   ;;  %v609_v20 = vld [vmem:[%s766_s1 + $0x68] sm:$0xff]   ;;  %v102_v34 = vsub.s32 %v99_v28, %v101_v29 }
   0x6   :  { %549 = vmatprep.subr.bf16.mxu1 %v595_v6  ;;  %v602_v13 = vld [vmem:[%s766_s1 + $0x18] sm:$0xff]   ;;  %v606_v17 = vld [vmem:[%s766_s1 + $0x20] sm:$0xff]   ;;  %v610_v24 = vld [vmem:[%s766_s1 + $0x28] sm:$0xff]  }
   0x7   :  { %528 = vmatpush3.bf16.msra.mxu0 %v594_v5  ;;  %v603_v14 = vld [vmem:[%s766_s1 + $0xd8] sm:$0xff]   ;;  %v607_v18 = vld [vmem:[%s766_s1 + $0xe0] sm:$0xff]   ;;  %v611_v25 = vld [vmem:[%s766_s1 + $0xe8] sm:$0xff]  }
   0x8   :  { %529 = vmatprep.subr.bf16.mxu0 %v597_v8  ;;  %v604_v15 = vld [vmem:[%s766_s1 + $0x98] sm:$0xff]   ;;  %v608_v19 = vld [vmem:[%s766_s1 + $0xa0] sm:$0xff]   ;;  %v612_v26 = vld [vmem:[%s766_s1 + $0xa8] sm:$0xff]  }
   0x9   :  { %550 = vmatpush3.bf16.msra.mxu1 %v596_v7  ;;  %v613_v27 = vld [vmem:[%s766_s1 + $0x70] sm:$0xff]   ;;  %v617_v33 = vld [vmem:[%s766_s1 + $0x78] sm:$0xff]   ;;  %v15_v37 = vld [vmem:[%s767_s0] sm:$0x1f] }
   0xa   :  { %551 = vmatprep.subr.bf16.mxu1 %v599_v10  ;;  %v614_v30 = vld [vmem:[%s766_s1 + $0x30] sm:$0xff]   ;;  %v618_v35 = vld [vmem:[%s766_s1 + $0x38] sm:$0xff]   ;;  %v103_v38 = vrot.slane %v15_v37, %v102_v34  ;;  %v622_v44 = vld [vmem:[%s766_s1 + $0x100] sm:$0xff]   ;;  %v96_v48 = vcombine.high %v15_v37, %v15_v37 }
   0xb   :  { %530 = vmatpush3.bf16.msra.mxu0 %v598_v9  ;;  %v615_v31 = vld [vmem:[%s766_s1 + $0xf0] sm:$0xff]   ;;  %v619_v36 = vld [vmem:[%s766_s1 + $0xf8] sm:$0xff]   ;;  %v623_v47 = vld [vmem:[%s766_s1 + $0x108] sm:$0xff]  }
   0xc   :  { %531 = vmatprep.subr.bf16.mxu0 %v601_v12  ;;  %v616_v32 = vld [vmem:[%s766_s1 + $0xb0] sm:$0xff]   ;;  %v621_v39 = vld [vmem:[%s766_s1 + $0xb8] sm:$0xff]   ;;  %v111_v41 = vcombine.high %v103_v38, %v103_v38  ;;  %v118_v42 = vrot.slane %v103_v38, %v102_v34  ;;  %v110_v50 = vrot.slane %v96_v48, %v102_v34  ;;  %v487_v54 = vld [vmem:[%s768_s2] ss:$0 sm:$0xff] }
   0xd   :  { %552 = vmatpush3.bf16.msra.mxu1 %v600_v11  ;;  %v624_v49 = vld [vmem:[%s766_s1 + $0x110] sm:$0xff]   ;;  %v625_v51 = vld [vmem:[%s766_s1 + $0x118] sm:$0xff]  }
   0xe   :  { %553 = vmatprep.subr.bf16.mxu1 %v603_v14  ;;  %v132_v43 = vrot.slane %v111_v41, %v102_v34  ;;  %v133_v45 = vcombine.high %v118_v42, %v118_v42  ;;  %v125_v52 = vrot.slane %v110_v50, %v102_v34 }
   0xf   :  { %532 = vmatpush3.bf16.msra.mxu0 %v602_v13 }
  0x10   :  { %533 = vmatprep.subr.bf16.mxu0 %v605_v16  ;;  %391 = vmatprep.mubr.bf16.mxu0 %v132_v43  ;;  %v134_v46 = vcombine.high %v132_v43, %v132_v43 }
  0x11   :  { %554 = vmatpush3.bf16.msra.mxu1 %v604_v15 }
  0x12   :  { %555 = vmatprep.subr.bf16.mxu1 %v607_v18  ;;  %431 = vmatprep.mubr.bf16.mxu1 %v134_v46 }
  0x13   :  { %534 = vmatpush3.bf16.msra.mxu0 %v606_v17 }
  0x14   :  { %535 = vmatprep.subr.bf16.mxu0 %v609_v20 }
  0x15   :  { %556 = vmatpush3.bf16.msra.mxu1 %v608_v19 }
  0x16   :  { %557 = vmatprep.subr.bf16.mxu1 %v611_v25 }
  0x17   :  { %536 = vmatpush3.bf16.msra.mxu0 %v610_v24 }
  0x18   :  { %537 = vmatprep.subr.bf16.mxu0 %v613_v27 }
  0x19   :  { %558 = vmatpush3.bf16.msra.mxu1 %v612_v26 }
  0x1a   :  { %559 = vmatprep.subr.bf16.mxu1 %v615_v31 }
  0x1b   :  { %538 = vmatpush3.bf16.msra.mxu0 %v614_v30 }
  0x1c   :  { %539 = vmatprep.subr.bf16.mxu0 %v617_v33 }
  0x1d   :  { %560 = vmatpush3.bf16.msra.mxu1 %v616_v32 }
  0x1e   :  { %561 = vmatprep.subr.bf16.mxu1 %v619_v36 }
  0x1f   :  { %540 = vmatpush3.bf16.msra.mxu0 %v618_v35 }
  0x20   :  { %574 = vmatprep.subr.bf16.mxu0 %v627_v40 }
  0x21   :  { %562 = vmatpush3.bf16.msra.mxu1 %v621_v39 }
  0x22   :  { %392 = vmatmul.mubr.bf16.vlgmr.msra.gmra.mrb[0].mxu0 %v118_v42 }
  0x23   :  { %575 = vmatpush3.bf16.msra.mxu0 %v622_v44  ;;  %582 = vmatprep.mubr.msk.bf16.mxu0 %vm628_vm0, %v627_v40 }
  0x24   :  { %432 = vmatmul.mubr.bf16.vlgmr.msra.gmra.mrb[0].mxu1 %v133_v45  ;;  %576 = vmatprep.subr.bf16.mxu0 %v627_v40 }
  0x27   :  { %577 = vmatpush3.bf16.msra.mxu0 %v623_v47 }
  0x28   :  { %578 = vmatprep.subr.bf16.mxu0 %v627_v40 }
  0x2b   :  { %579 = vmatpush3.bf16.msra.mxu0 %v624_v49 }
  0x2c   :  { %580 = vmatprep.subr.bf16.mxu0 %v627_v40 }
  0x2f   :  { %581 = vmatpush3.bf16.msra.mxu0 %v625_v51 }
  0x32   :  { %583 = vmatmul.mubr.msk.bf16.vlgmr.msra.gmra.mrb[4].mxu0 %vm355_vm1, %v125_v52 }
  0xf5   :  { %v541_v53 = vpop.f32.mrb[0].mxu0 }
  0xf6   :  { %v542_v55 = vpop.f32.mrb[1].mxu0 }
  0xf7   :  { %v543_v56 = vadd.f32 %v542_v55, %v541_v53  ;;  %v544_v57 = vpop.f32.mrb[2].mxu0  ;;  %v563_v58 = vpop.f32.mrb[0].mxu1 }
  0xf8   :  { %v545_v59 = vpop.f32.mrb[3].mxu0  ;;  %v564_v60 = vpop.f32.mrb[1].mxu1 }
  0xf9   :  { %v394_v61 = vadd.f32 %v543_v56, %v487_v54  ;;  %v565_v62 = vadd.f32 %v564_v60, %v563_v58  ;;  %v566_v63 = vpop.f32.mrb[2].mxu1 }
  0xfa   :  { %v567_v0 = vpop.f32.mrb[3].mxu1 }
  0xfb   :  { %v434_v1 = vadd.f32 %v565_v62, %v394_v61 }
 0x105   :  { %v473_v2 = vpop.f32.mrb[4].mxu0 }
 0x106   :  { %v474_v3 = vadd.f32 %v473_v2, %v434_v1  ;;  %v584_v4 = vpop.f32.mrb[5].mxu0 }
 0x107   :  { %v476_v5 = vpop.f32.mrb[6].mxu0 }
 0x108   :  { %v479_v6 = vmax.f32 %v474_v3, 0.0  ;;  %v585_v7 = vpop.f32.mrb[7].mxu0 }
 0x10a   :  { %v480_v8 = vpack.c.bf16 %v479_v6, %v479_v6 }
 0x10c   :  { %482 = vst.msk [vmem:[%s769_s3] sm:$0x1] %vm481_vm2, %v480_v8 }

// kernel: cnn_forward.7
= control target key start
LH: loop header
LB: loop body
LE: loop exit
PB: predicated region body
PF: predicated region fallthrough
CT: control target
= control target key end

     0   :  { %v770_v2 = vmov 0   ;;  %vm141_vm0 = vcmask 523264   ;;  %s967_s0 = inlined_call_operand.vmem [shape: bf16[2,64], index: 0, kind: input, shape index: {}]   ;;  %s968_s1 = inlined_call_operand.vmem [shape: bf16[64,512], index: 1, kind: input, shape index: {}]   ;;  %s969_s2 = inlined_call_operand.vmem [shape: f32[1,512], index: 2, kind: input, shape index: {}]   ;;  %s970_s3 = inlined_call_operand.vmem [shape: bf16[512,128], index: 3, kind: input, shape index: {}]   ;;  %s971_s4 = inlined_call_operand.vmem [shape: f32[1,128], index: 4, kind: input, shape index: {}]   ;;  %s972_s5 = inlined_call_operand.hbm [shape: f32[2,128], index: 5, kind: output, shape index: {}]  }
   0x1   :  { %v690_v0 = vld [vmem:[%s968_s1 + $0x4] ss:$16 sps:$4 sm:$0xff]   ;;  %v692_v1 = vld [vmem:[%s968_s1 + $0xc] ss:$16 sps:$4 sm:$0xff]   ;;  %177 = vmatprep.mubr.bf16.mxu0 %v770_v2  ;;  %218 = vmatprep.mubr.bf16.mxu1 %v770_v2  ;;  %v694_v3 = vld [vmem:[%s968_s1] ss:$16 sps:$4 sm:$0xff]  }
   0x2   :  { %145 = vmatprep.subr.bf16.mxu0 %v690_v0  ;;  %v695_v4 = vld [vmem:[%s968_s1 + $0x8] ss:$16 sps:$4 sm:$0xff]   ;;  %186 = vmatprep.subr.bf16.mxu1 %v692_v1  ;;  %v696_v5 = vld [vmem:[%s968_s1 + $0x24] ss:$16 sps:$4 sm:$0xff]   ;;  %v698_v6 = vld [vmem:[%s968_s1 + $0x2c] ss:$16 sps:$4 sm:$0xff]  }
   0x3   :  { %146 = vmatpush1.bf16.msra.mxu0 %v694_v3  ;;  %187 = vmatpush1.bf16.msra.mxu1 %v695_v4  ;;  %v700_v7 = vld [vmem:[%s968_s1 + $0x20] ss:$16 sps:$4 sm:$0xff]   ;;  %v701_v8 = vld [vmem:[%s968_s1 + $0x28] ss:$16 sps:$4 sm:$0xff]   ;;  %v702_v9 = vld [vmem:[%s968_s1 + $0x44] ss:$16 sps:$4 sm:$0xff]  }
   0x4   :  { %147 = vmatprep.subr.bf16.mxu0 %v696_v5  ;;  %188 = vmatprep.subr.bf16.mxu1 %v698_v6  ;;  %v704_v10 = vld [vmem:[%s968_s1 + $0x4c] ss:$16 sps:$4 sm:$0xff]   ;;  %v706_v11 = vld [vmem:[%s968_s1 + $0x40] ss:$16 sps:$4 sm:$0xff]   ;;  %v707_v12 = vld [vmem:[%s968_s1 + $0x48] ss:$16 sps:$4 sm:$0xff]  }
   0x5   :  { %v708_v13 = vld [vmem:[%s968_s1 + $0x64] ss:$16 sps:$4 sm:$0xff]   ;;  %v710_v14 = vld [vmem:[%s968_s1 + $0x6c] ss:$16 sps:$4 sm:$0xff]   ;;  %v712_v15 = vld [vmem:[%s968_s1 + $0x60] ss:$16 sps:$4 sm:$0xff]  }
   0x6   :  { %v713_v16 = vld [vmem:[%s968_s1 + $0x68] ss:$16 sps:$4 sm:$0xff]   ;;  %v714_v17 = vld [vmem:[%s970_s3 + $0x40] sm:$0xff]   ;;  %v722_v26 = vld [vmem:[%s970_s3 + $0x50] sm:$0xff]  }
   0x7   :  { %148 = vmatpush1.bf16.msra.mxu0 %v700_v7  ;;  %189 = vmatpush1.bf16.msra.mxu1 %v701_v8  ;;  %v715_v18 = vld [vmem:[%s970_s3 + $0xc0] sm:$0xff]   ;;  %v718_v22 = vld [vmem:[%s970_s3 + $0x48] sm:$0xff]   ;;  %v723_v27 = vld [vmem:[%s970_s3 + $0xd0] sm:$0xff]  }
   0x8   :  { %149 = vmatprep.subr.bf16.mxu0 %v702_v9  ;;  %190 = vmatprep.subr.bf16.mxu1 %v704_v10  ;;  %v22_v19 = vld [vmem:[%s967_s0] sm:$0x1]  ;;  %v719_v23 = vld [vmem:[%s970_s3 + $0xc8] sm:$0xff]   ;;  %v724_v28 = vld [vmem:[%s970_s3 + $0x10] sm:$0xff]  }
   0x9   :  { %v716_v20 = vld [vmem:[%s970_s3] sm:$0xff]   ;;  %v720_v24 = vld [vmem:[%s970_s3 + $0x8] sm:$0xff]   ;;  %v725_v29 = vld [vmem:[%s970_s3 + $0x90] sm:$0xff]  }
   0xa   :  { %v717_v21 = vld [vmem:[%s970_s3 + $0x80] sm:$0xff]   ;;  %v721_v25 = vld [vmem:[%s970_s3 + $0x88] sm:$0xff]   ;;  %v726_v30 = vld [vmem:[%s970_s3 + $0x58] sm:$0xff]  }
   0xb   :  { %150 = vmatpush1.bf16.msra.mxu0 %v706_v11  ;;  %191 = vmatpush1.bf16.msra.mxu1 %v707_v12  ;;  %v727_v31 = vld [vmem:[%s970_s3 + $0xd8] sm:$0xff]   ;;  %v730_v34 = vld [vmem:[%s970_s3 + $0x60] sm:$0xff]   ;;  %v734_v38 = vld [vmem:[%s970_s3 + $0x68] sm:$0xff]  }
   0xc   :  { %151 = vmatprep.subr.bf16.mxu0 %v708_v13  ;;  %192 = vmatprep.subr.bf16.mxu1 %v710_v14  ;;  %v728_v32 = vld [vmem:[%s970_s3 + $0x18] sm:$0xff]   ;;  %v731_v35 = vld [vmem:[%s970_s3 + $0xe0] sm:$0xff]   ;;  %v735_v39 = vld [vmem:[%s970_s3 + $0xe8] sm:$0xff]  }
   0xd   :  { %v729_v33 = vld [vmem:[%s970_s3 + $0x98] sm:$0xff]   ;;  %v732_v36 = vld [vmem:[%s970_s3 + $0x20] sm:$0xff]   ;;  %v736_v40 = vld [vmem:[%s970_s3 + $0x28] sm:$0xff]  }
   0xe   :  { %v733_v37 = vld [vmem:[%s970_s3 + $0xa0] sm:$0xff]   ;;  %v737_v41 = vld [vmem:[%s970_s3 + $0xa8] sm:$0xff]  }
   0xf   :  { %152 = vmatpush1.bf16.msra.mxu0 %v712_v15  ;;  %193 = vmatpush1.bf16.msra.mxu1 %v713_v16 }
  0x10   :  { %644 = vmatprep.subr.bf16.mxu0 %v714_v17  ;;  %666 = vmatprep.subr.bf16.mxu1 %v715_v18 }
  0x12   :  { %609 = vmatmul.mubr.msk.bf16.vlgmr.msra.gmra.mrb[0].mxu0 %vm141_vm0, %v22_v19  ;;  %610 = vmatmul.mubr.msk.bf16.vlgmr.msra.gmra.mrb[0].mxu1 %vm141_vm0, %v22_v19 }
  0x13   :  { %645 = vmatpush3.bf16.msra.mxu0 %v716_v20  ;;  %667 = vmatpush3.bf16.msra.mxu1 %v717_v21 }
  0x14   :  { %646 = vmatprep.subr.bf16.mxu0 %v718_v22  ;;  %668 = vmatprep.subr.bf16.mxu1 %v719_v23 }
  0x17   :  { %647 = vmatpush3.bf16.msra.mxu0 %v720_v24  ;;  %669 = vmatpush3.bf16.msra.mxu1 %v721_v25 }
  0x18   :  { %648 = vmatprep.subr.bf16.mxu0 %v722_v26  ;;  %670 = vmatprep.subr.bf16.mxu1 %v723_v27 }
  0x1b   :  { %649 = vmatpush3.bf16.msra.mxu0 %v724_v28  ;;  %671 = vmatpush3.bf16.msra.mxu1 %v725_v29 }
  0x1c   :  { %650 = vmatprep.subr.bf16.mxu0 %v726_v30  ;;  %672 = vmatprep.subr.bf16.mxu1 %v727_v31 }
  0x1f   :  { %651 = vmatpush3.bf16.msra.mxu0 %v728_v32  ;;  %673 = vmatpush3.bf16.msra.mxu1 %v729_v33 }
  0x20   :  { %652 = vmatprep.subr.bf16.mxu0 %v730_v34  ;;  %674 = vmatprep.subr.bf16.mxu1 %v731_v35 }
  0x23   :  { %653 = vmatpush3.bf16.msra.mxu0 %v732_v36  ;;  %675 = vmatpush3.bf16.msra.mxu1 %v733_v37 }
  0x24   :  { %654 = vmatprep.subr.bf16.mxu0 %v734_v38  ;;  %676 = vmatprep.subr.bf16.mxu1 %v735_v39 }
  0x27   :  { %655 = vmatpush3.bf16.msra.mxu0 %v736_v40  ;;  %677 = vmatpush3.bf16.msra.mxu1 %v737_v41 }
  0x28   :  { %10 = vsyncpa [#allocation3], 0  ;;  %v738_v42 = vld [vmem:[%s970_s3 + $0x70] sm:$0xff]   ;;  %v742_v46 = vld [vmem:[%s970_s3 + $0x78] sm:$0xff]   ;;  %v41_v50 = vlaneseq  ;;  %s771_s0 = smov [#allocation2]  }
  0x29   :  { %v739_v43 = vld [vmem:[%s970_s3 + $0xf0] sm:$0xff]   ;;  %656 = vmatprep.subr.bf16.mxu0 %v738_v42  ;;  %v743_v47 = vld [vmem:[%s970_s3 + $0xf8] sm:$0xff]   ;;  %v39_v54 = vld [vmem:[%s969_s2] sm:$0xf]  ;;  %s585_s13 = sshll.u32 %s771_s0, 4  ;;  %s586_s13 = int_to_ptr.vmem [resolvable:$true] %s585_s13 }
  0x2a   :  { %v740_v44 = vld [vmem:[%s970_s3 + $0x30] sm:$0xff]   ;;  %678 = vmatprep.subr.bf16.mxu1 %v739_v43  ;;  %v744_v48 = vld [vmem:[%s970_s3 + $0x38] sm:$0xff]   ;;  %v42_v51 = vshrl.u32 %v41_v50, 7  ;;  %v611_v19 = vld [vmem:[%s971_s4] ss:$0 sm:$0xff]  ;;  %s746_s14 = scalar_lea.vmem %s586_s13, 32  ;;  %p751_p1 = scmp.lt.s32.totalorder %s586_s13, %s586_s13 }
  0x2b   :  { %v741_v45 = vld [vmem:[%s970_s3 + $0xb0] sm:$0xff]   ;;  %657 = vmatpush3.bf16.msra.mxu0 %v740_v44  ;;  %v745_v49 = vld [vmem:[%s970_s3 + $0xb8] sm:$0xff]   ;;  %p747_p0 = scmp.ne.s32.totalorder %s586_s13, %s746_s14  ;;  %p752_p2 = scmp.lt.s32.totalorder %s746_s14, %s746_s14 }
  0x2c   :  { %679 = vmatpush3.bf16.msra.mxu1 %v741_v45  ;;  %658 = vmatprep.subr.bf16.mxu0 %v742_v46  ;;  %v43_v52 = vsub.s32 0, %v42_v51  ;;  %v51_v53 = vsub.s32 2, %v42_v51  ;;  %v47_v55 = vsub.s32 1, %v42_v51  ;;  %v55_v56 = vsub.s32 3, %v42_v51 }
  0x2d   :  { %680 = vmatprep.subr.bf16.mxu1 %v743_v47  ;;  %p753_p3 = por %p752_p2, %p751_p1 }
  0x2e   :  { %v44_v57 = vrot.slane %v39_v54, %v43_v52  ;;  %v52_v58 = vrot.slane %v39_v54, %v51_v53  ;;  %v48_v59 = vrot.slane %v39_v54, %v47_v55  ;;  %v56_v60 = vrot.slane %v39_v54, %v55_v56 }
  0x2f   :  { %659 = vmatpush3.bf16.msra.mxu0 %v744_v48  ;;  %p754_p4 = pnand %p753_p3, %p747_p0 }
  0x30   :  { %681 = vmatpush3.bf16.msra.mxu1 %v745_v49 }
  0xe5   :  { %v179_v61 = vpop.f32.mrb[0].mxu0  ;;  %v220_v62 = vpop.f32.mrb[0].mxu1 }
  0xe6   :  { %v180_v63 = vadd.f32 %v179_v61, %v44_v57  ;;  %v221_v0 = vadd.f32 %v220_v62, %v52_v58  ;;  %v181_v1 = vpop.f32.mrb[1].mxu0  ;;  %v222_v2 = vpop.f32.mrb[1].mxu1 }
  0xe7   :  { %v182_v3 = vadd.f32 %v181_v1, %v48_v59  ;;  %v223_v4 = vadd.f32 %v222_v2, %v56_v60  ;;  %v183_v5 = vpop.f32.mrb[2].mxu0  ;;  %v224_v6 = vpop.f32.mrb[2].mxu1 }
  0xe8   :  { %v227_v7 = vmax.f32 %v180_v63, 0.0  ;;  %v229_v8 = vmax.f32 %v221_v0, 0.0  ;;  %v184_v9 = vpop.f32.mrb[3].mxu0  ;;  %v225_v10 = vpop.f32.mrb[3].mxu1 }
  0xe9   :  { %v228_v11 = vmax.f32 %v182_v3, 0.0  ;;  %v230_v12 = vmax.f32 %v223_v4, 0.0 }
  0xea   :  { %v233_v13 = vpack.c.bf16 %v229_v8, %v229_v8  ;;  %v231_v16 = vpack.c.bf16 %v227_v7, %v227_v7 }
  0xeb   :  { %v232_v14 = vpack.c.bf16 %v228_v11, %v228_v11  ;;  %v234_v15 = vpack.c.bf16 %v230_v12, %v230_v12 }
  0xed   :  { %530 = vmatprep.mubr.bf16.mxu0 %v232_v14  ;;  %570 = vmatprep.mubr.bf16.mxu1 %v234_v15 }
  0xee   :  { %531 = vmatmul.mubr.bf16.vlgmr.msra.gmra.mrb[4].mxu0 %v231_v16  ;;  %571 = vmatmul.mubr.bf16.vlgmr.msra.gmra.mrb[4].mxu1 %v233_v13 }
 0x1c1   :  { %v660_v17 = vpop.f32.mrb[4].mxu0  ;;  %v682_v18 = vpop.f32.mrb[4].mxu1 }
 0x1c2   :  { %v661_v20 = vpop.f32.mrb[5].mxu0  ;;  %v683_v21 = vpop.f32.mrb[5].mxu1 }
 0x1c3   :  { %v662_v22 = vadd.f32 %v661_v20, %v660_v17  ;;  %v684_v23 = vadd.f32 %v683_v21, %v682_v18  ;;  %v663_v24 = vpop.f32.mrb[6].mxu0  ;;  %v685_v25 = vpop.f32.mrb[6].mxu1 }
 0x1c4   :  { %v664_v26 = vpop.f32.mrb[7].mxu0  ;;  %v686_v27 = vpop.f32.mrb[7].mxu1 }
 0x1c5   :  { %v533_v28 = vadd.f32 %v662_v22, %v611_v19 }
 0x1c7   :  { %v573_v29 = vadd.f32 %v684_v23, %v533_v28 }
 0x1c9   :  { %578 = vst [vmem:[#allocation2] sm:$0x3] %v573_v29 }
 0x1ca   :  { %757 = shalt.err (!%p754_p4)
}
 0x1cb   :  { %s758_s16 = scalar_lea.hbm %s972_s5, 32 }
 0x1cc   :  { %p759_p5 = scmp.ne.s32.totalorder %s972_s5, %s758_s16  ;;  %p762_p6 = scmp.lt.u32.totalorder %s758_s16, %s972_s5 }
 0x1ce   :  { %p764_p7 = pnand %p762_p6, %p759_p5 }
 0x1d0   :  { %767 = shalt.err (!%p764_p7)
}
 0x1d1   :  { %588 = dma.vmem_to_hbm [thread:$0]  %s586_s13, 32, %s972_s5, [#allocation3]  }
 0x1d2   :  { %768 = dma.done.wait [#allocation3], 32  }
 0x1d3   :  { %769 = vsyncadd [#allocation3], 4294967264 }
 0x1d4   :  { %592 = vsyncpa [#allocation3], 1 }

</bundles_post_ra>
